<compile_context>
chip_gen: v6e
topology: v6e:2x2x1
jax: 0.10.0
libtpu: 0.0.40
codegen_flags: <defaults>
</compile_context>

<pallas_src>
import functools
import math

import jax
import jax.numpy as jnp
from jax.experimental import pallas as pl
from jax.experimental.pallas import tpu as pltpu

D_IN = 32
D_HID = 64
EPS = 1e-5
PACK = 128 // D_IN                 # 4 tokens per 128-lane row
DEFAULT_TILE_PACKED_ROWS = 2048    # max packed rows per grid step (1 MB f32)
SUB_ROWS = 256                     # in-kernel sub-block (packed rows)


def _round_up(a, b):
    return -(-a // b) * b


def fc_output_kernel(x_ref, m_ref, w1_ref, b1_ref, w2_ref, b2_ref, o_ref,
                     *, sub, nsub):
    # x_ref : (TR, 128)  = (TR rows, 4 tokens x 32 features), input dtype
    # m_ref : (128, 128) bf16 block-diag mean operator (ones(32,32)/32 blocks)
    # w1_ref: (128, 256) bf16 block-diag gamma-folded W1 ; b1_ref: (1, 256) f32
    # w2_ref: (256, 128) bf16 block-diag W2              ; b2_ref: (1, 128) f32
    m = m_ref[...]
    w1 = w1_ref[...]
    b1 = b1_ref[...]
    w2 = w2_ref[...]
    b2 = b2_ref[...]

    def sub_block(s, carry):
        r = s * sub
        if not isinstance(r, int):
            r = pl.multiple_of(r, sub)          # aligned dynamic sub-slice
        x = x_ref[pl.ds(r, sub), :].astype(jnp.float32)

        # LayerNorm over each token's 32 lanes: segmented reduce on the MXU,
        # result comes back already broadcast across that token's lanes.
        # bf16 operands, f32 accumulation; var from f32-centered xc (two-pass)
        # so mean-truncation error only enters linearly, never quadratically.
        mean = jnp.dot(x.astype(jnp.bfloat16), m,
                       preferred_element_type=jnp.float32)
        xc = x - mean
        var = jnp.dot((xc * xc).astype(jnp.bfloat16), m,
                      preferred_element_type=jnp.float32)
        xn = (xc * jax.lax.rsqrt(var + EPS)).astype(jnp.bfloat16)

        # Linear(32 -> 64) + ReLU  (LN affine + bias folded into w1/b1).
        h = jnp.dot(xn, w1, preferred_element_type=jnp.float32) + b1
        h = jnp.maximum(h, 0.0).astype(jnp.bfloat16)

        # Linear(64 -> 32)
        y = jnp.dot(h, w2, preferred_element_type=jnp.float32) + b2

        # Dropout(p=0.1) -> identity in eval mode.  Residual with pre-norm x.
        o_ref[pl.ds(r, sub), :] = (y + x).astype(o_ref.dtype)
        return carry

    if nsub > 1:
        jax.lax.fori_loop(0, nsub, sub_block, 0, unroll=2)
    else:
        sub_block(0, 0)


def fully_connected_output(x, gamma, beta, w1, b1, w2, b2,
                           tile_packed_rows=DEFAULT_TILE_PACKED_ROWS):
    B, S, H = x.shape
    assert H == D_IN
    f32, bf16 = jnp.float32, jnp.bfloat16

    # ---- fold LayerNorm affine + first bias into the first linear (f32) ----
    w1f = gamma.astype(f32)[:, None] * w1.astype(f32)          # (32, 64)
    b1f = b1.astype(f32) + beta.astype(f32) @ w1.astype(f32)   # (64,)

    # ---- block-diagonal "packed token" operators, bf16 for the MXU ---------
    eye4 = jnp.eye(PACK, dtype=f32)
    m_blk = jnp.kron(eye4, jnp.full((D_IN, D_IN), 1.0 / D_IN, f32)).astype(bf16)
    w1_blk = jnp.kron(eye4, w1f).astype(bf16)                        # (128,256)
    w2_blk = jnp.kron(eye4, w2.astype(f32)).astype(bf16)             # (256,128)
    b1_t = jnp.tile(b1f, PACK).reshape(1, PACK * D_HID)              # f32 (1,256)
    b2_t = jnp.tile(b2.astype(f32), PACK).reshape(1, PACK * D_IN)    # f32 (1,128)

    # ---- pack tokens 4-per-row (free contiguous reshape) -------------------
    n_tok = B * S
    n_rows = pl.cdiv(n_tok, PACK)
    xf = x.reshape(n_tok, D_IN)
    if n_tok % PACK:                       # rare: only when tokens % 4 != 0
        xf = jnp.pad(xf, ((0, n_rows * PACK - n_tok), (0, 0)))
    xp = xf.reshape(n_rows, PACK * D_IN)   # (rows, 128), input dtype

    # ---- row tile: >=4 grid steps (v7x dual-TC + pipelining), 8-aligned ----
    tr = min(tile_packed_rows, _round_up(pl.cdiv(n_rows, 4), 8))
    sub = SUB_ROWS if tr >= SUB_ROWS else tr
    tr = _round_up(tr, sub)
    nsub = tr // sub
    grid = (pl.cdiv(n_rows, tr),)          # partial last block handled by Pallas

    const = lambda i: (0, 0)
    kernel = functools.partial(fc_output_kernel, sub=sub, nsub=nsub)

    flops = n_rows * (2 * 2 * 128 * 128 + 2 * 128 * 256 + 2 * 256 * 128)
    param_bytes = (2 * (m_blk.size + w1_blk.size + w2_blk.size)
                   + 4 * (b1_t.size + b2_t.size))
    bytes_io = 2 * n_rows * 128 * jnp.dtype(x.dtype).itemsize + param_bytes

    out_p = pl.pallas_call(
        kernel,
        out_shape=jax.ShapeDtypeStruct((n_rows, PACK * D_IN), x.dtype),
        grid=grid,
        in_specs=[
            pl.BlockSpec((tr, PACK * D_IN), lambda i: (i, 0)),          # x tile
            pl.BlockSpec((PACK * D_IN, PACK * D_IN), const),            # mean op
            pl.BlockSpec((PACK * D_IN, PACK * D_HID), const),           # W1 blk
            pl.BlockSpec((1, PACK * D_HID), const),                     # b1
            pl.BlockSpec((PACK * D_HID, PACK * D_IN), const),           # W2 blk
            pl.BlockSpec((1, PACK * D_IN), const),                      # b2
        ],
        out_specs=pl.BlockSpec((tr, PACK * D_IN), lambda i: (i, 0)),
        compiler_params=pltpu.CompilerParams(
            dimension_semantics=("parallel",),   # v7x: shard rows over 2 TCs
            vmem_limit_bytes=32 * 1024 * 1024,   # safe on v7x's 64 MiB VMEM
        ),
        cost_estimate=pl.CostEstimate(
            flops=flops, transcendentals=n_rows * 128, bytes_accessed=bytes_io),
    )(xp, m_blk, w1_blk, b1_t, w2_blk, b2_t)

    out = out_p.reshape(n_rows * PACK, D_IN)
    if n_tok != n_rows * PACK:             # only in the ragged-token case
        out = out[:n_tok]
    return out.reshape(B, S, D_IN)


def reference(x, gamma, beta, w1, b1, w2, b2):
    hp = jax.lax.Precision.HIGHEST
    xf = x.astype(jnp.float32)
    mean = jnp.mean(xf, axis=-1, keepdims=True)
    var = jnp.mean((xf - mean) ** 2, axis=-1, keepdims=True)
    xn = (xf - mean) * jax.lax.rsqrt(var + EPS) * gamma + beta
    h = jnp.maximum(jnp.dot(xn, w1, precision=hp) + b1, 0.0)
    y = jnp.dot(h, w2, precision=hp) + b2
    return (y + xf).astype(x.dtype)


def _check(out, ref):
    # Tolerances reflect explicit bf16 MXU operands (f32 accumulation).
    err = jnp.abs(out.astype(jnp.float32) - ref.astype(jnp.float32))
    tol = 4e-2 + 4e-2 * jnp.abs(ref.astype(jnp.float32))
    assert bool(jnp.all(err <= tol)), float(jnp.max(err))
    assert float(jnp.mean(err)) < 5e-3, float(jnp.mean(err))


if __name__ == "__main__":
    key = jax.random.PRNGKey(0)
    k_x, k_w1, k_b1, k_w2, k_b2, k_g, k_bt, k_x2 = jax.random.split(key, 8)

    # Deterministic parameter init (PyTorch-Linear-style uniform bounds).
    bound1 = 1.0 / math.sqrt(D_IN)
    w1 = jax.random.uniform(k_w1, (D_IN, D_HID), jnp.float32, -bound1, bound1)
    b1 = jax.random.uniform(k_b1, (D_HID,), jnp.float32, -bound1, bound1)
    bound2 = 1.0 / math.sqrt(D_HID)
    w2 = jax.random.uniform(k_w2, (D_HID, D_IN), jnp.float32, -bound2, bound2)
    b2 = jax.random.uniform(k_b2, (D_IN,), jnp.float32, -bound2, bound2)
    # Non-trivial LN affine so the gamma/beta folding is actually exercised.
    gamma = 1.0 + 0.1 * jax.random.normal(k_g, (D_IN,), jnp.float32)
    beta = 0.1 * jax.random.normal(k_bt, (D_IN,), jnp.float32)

    fc = jax.jit(fully_connected_output)

    # Small shape from the module spec: batch=2, seq=8, hidden=32.
    B, S = 2, 8
    x = jax.random.normal(k_x, (B, S, D_IN), dtype=jnp.float32)
    out = jax.block_until_ready(fc(x, gamma, beta, w1, b1, w2, b2))
    assert out.shape == (B, S, D_IN)
    _check(out, reference(x, gamma, beta, w1, b1, w2, b2))

    # Larger shape: ragged row count, multi-step grid, partial last block.
    B2, S2 = 2, 5000
    x2 = jax.random.normal(k_x2, (B2, S2, D_IN), dtype=jnp.float32)
    out2 = jax.block_until_ready(fc(x2, gamma, beta, w1, b1, w2, b2))
    assert out2.shape == (B2, S2, D_IN)
    _check(out2, reference(x2, gamma, beta, w1, b1, w2, b2))

    print("KERNEL_OK")
</pallas_src>

<mosaic_0001>
module attributes {stable_mosaic.version = 11 : i64} {
  func.func @fc_output_kernel(%arg0: i32, %arg1: memref<8x128xf32, #tpu.memory_space<vmem>>, %arg2: memref<128x128xbf16, #tpu.memory_space<vmem>>, %arg3: memref<128x256xbf16, #tpu.memory_space<vmem>>, %arg4: memref<1x256xf32, #tpu.memory_space<vmem>>, %arg5: memref<256x128xbf16, #tpu.memory_space<vmem>>, %arg6: memref<1x128xf32, #tpu.memory_space<vmem>>, %arg7: memref<8x128xf32, #tpu.memory_space<vmem>>) attributes {dimension_semantics = [#tpu.dimension_semantics<parallel>], iteration_bounds = array<i64: 1>, scalar_prefetch = 0 : i64, scratch_operands = 0 : i64, tpu.core_type = #tpu.core_type<tc>, window_params = [{transform_indices = @transform_0, window_bounds = array<i64: 8, 128>}, {pipeline_mode = #tpu.pipeline_mode<synchronous>, transform_indices = @transform_1, window_bounds = array<i64: 128, 128>}, {pipeline_mode = #tpu.pipeline_mode<synchronous>, transform_indices = @transform_2, window_bounds = array<i64: 128, 256>}, {pipeline_mode = #tpu.pipeline_mode<synchronous>, transform_indices = @transform_3, window_bounds = array<i64: 1, 256>}, {pipeline_mode = #tpu.pipeline_mode<synchronous>, transform_indices = @transform_4, window_bounds = array<i64: 256, 128>}, {pipeline_mode = #tpu.pipeline_mode<synchronous>, transform_indices = @transform_5, window_bounds = array<i64: 1, 128>}, {transform_indices = @transform_6, window_bounds = array<i64: 8, 128>}]} {
    %c0 = arith.constant 0 : index
    %c0_0 = arith.constant 0 : index
    %0 = vector.load %arg2[%c0, %c0_0] : memref<128x128xbf16, #tpu.memory_space<vmem>>, vector<128x128xbf16>
    %c0_1 = arith.constant 0 : index
    %c0_2 = arith.constant 0 : index
    %1 = vector.load %arg3[%c0_1, %c0_2] : memref<128x256xbf16, #tpu.memory_space<vmem>>, vector<128x256xbf16>
    %c0_3 = arith.constant 0 : index
    %c0_4 = arith.constant 0 : index
    %2 = vector.load %arg4[%c0_3, %c0_4] : memref<1x256xf32, #tpu.memory_space<vmem>>, vector<1x256xf32>
    %c0_5 = arith.constant 0 : index
    %c0_6 = arith.constant 0 : index
    %3 = vector.load %arg5[%c0_5, %c0_6] : memref<256x128xbf16, #tpu.memory_space<vmem>>, vector<256x128xbf16>
    %c0_7 = arith.constant 0 : index
    %c0_8 = arith.constant 0 : index
    %4 = vector.load %arg6[%c0_7, %c0_8] : memref<1x128xf32, #tpu.memory_space<vmem>>, vector<1x128xf32>
    %c0_9 = arith.constant 0 : index
    %c0_10 = arith.constant 0 : index
    %5 = vector.load %arg1[%c0_9, %c0_10] : memref<8x128xf32, #tpu.memory_space<vmem>>, vector<8x128xf32>
    %6 = arith.truncf %5 : vector<8x128xf32> to vector<8x128xbf16>
    %cst = arith.constant dense<0.000000e+00> : vector<8x128xf32>
    %7 = tpu.matmul %6, %0, %cst {dimension_numbers = #tpu.dot_dimension_numbers<[1], [0], [0], [1], [0, 0, 1, 1], [], []>} : vector<8x128xbf16>, vector<128x128xbf16>, vector<8x128xf32> -> vector<8x128xf32>
    %8 = arith.subf %5, %7 : vector<8x128xf32>
    %9 = arith.mulf %8, %8 : vector<8x128xf32>
    %10 = arith.truncf %9 : vector<8x128xf32> to vector<8x128xbf16>
    %cst_11 = arith.constant dense<0.000000e+00> : vector<8x128xf32>
    %11 = tpu.matmul %10, %0, %cst_11 {dimension_numbers = #tpu.dot_dimension_numbers<[1], [0], [0], [1], [0, 0, 1, 1], [], []>} : vector<8x128xbf16>, vector<128x128xbf16>, vector<8x128xf32> -> vector<8x128xf32>
    %cst_12 = arith.constant 9.99999974E-6 : f32
    %12 = vector.broadcast %cst_12 : f32 to vector<8x128xf32>
    %13 = arith.addf %11, %12 : vector<8x128xf32>
    %14 = math.rsqrt %13 : vector<8x128xf32>
    %15 = arith.mulf %8, %14 : vector<8x128xf32>
    %16 = arith.truncf %15 : vector<8x128xf32> to vector<8x128xbf16>
    %cst_13 = arith.constant dense<0.000000e+00> : vector<8x256xf32>
    %17 = tpu.matmul %16, %1, %cst_13 {dimension_numbers = #tpu.dot_dimension_numbers<[1], [0], [0], [1], [0, 0, 1, 1], [], []>} : vector<8x128xbf16>, vector<128x256xbf16>, vector<8x256xf32> -> vector<8x256xf32>
    %18 = vector.broadcast %2 : vector<1x256xf32> to vector<8x256xf32>
    %19 = arith.addf %17, %18 : vector<8x256xf32>
    %cst_14 = arith.constant 0.000000e+00 : f32
    %20 = vector.broadcast %cst_14 : f32 to vector<8x256xf32>
    %21 = arith.maximumf %19, %20 : vector<8x256xf32>
    %22 = arith.truncf %21 : vector<8x256xf32> to vector<8x256xbf16>
    %cst_15 = arith.constant dense<0.000000e+00> : vector<8x128xf32>
    %23 = tpu.matmul %22, %3, %cst_15 {dimension_numbers = #tpu.dot_dimension_numbers<[1], [0], [0], [1], [0, 0, 1, 1], [], []>} : vector<8x256xbf16>, vector<256x128xbf16>, vector<8x128xf32> -> vector<8x128xf32>
    %24 = vector.broadcast %4 : vector<1x128xf32> to vector<8x128xf32>
    %25 = arith.addf %23, %24 : vector<8x128xf32>
    %26 = arith.addf %25, %5 : vector<8x128xf32>
    %c0_16 = arith.constant 0 : index
    %c0_17 = arith.constant 0 : index
    %27 = vector.load %arg7[%c0_16, %c0_17] : memref<8x128xf32, #tpu.memory_space<vmem>>, vector<8x128xf32>
    tpu.vector_store %arg7[%c0_16, %c0_17], %26 {strides = array<i32>} : memref<8x128xf32, #tpu.memory_space<vmem>>, vector<8x128xf32>,
    return
  }
  func.func @transform_0(%arg0: i32) -> (i32, i32) {
    %c0_i32 = arith.constant 0 : i32
    %c0_i32_0 = arith.constant 0 : i32
    return %arg0, %c0_i32 : i32, i32
  }
  func.func @transform_1(%arg0: i32) -> (i32, i32) {
    %c0_i32 = arith.constant 0 : i32
    %c0_i32_0 = arith.constant 0 : i32
    %c0_i32_1 = arith.constant 0 : i32
    return %c0_i32, %c0_i32_0 : i32, i32
  }
  func.func @transform_2(%arg0: i32) -> (i32, i32) {
    %c0_i32 = arith.constant 0 : i32
    %c0_i32_0 = arith.constant 0 : i32
    %c0_i32_1 = arith.constant 0 : i32
    return %c0_i32, %c0_i32_0 : i32, i32
  }
  func.func @transform_3(%arg0: i32) -> (i32, i32) {
    %c0_i32 = arith.constant 0 : i32
    %c0_i32_0 = arith.constant 0 : i32
    %c0_i32_1 = arith.constant 0 : i32
    return %c0_i32, %c0_i32_0 : i32, i32
  }
  func.func @transform_4(%arg0: i32) -> (i32, i32) {
    %c0_i32 = arith.constant 0 : i32
    %c0_i32_0 = arith.constant 0 : i32
    %c0_i32_1 = arith.constant 0 : i32
    return %c0_i32, %c0_i32_0 : i32, i32
  }
  func.func @transform_5(%arg0: i32) -> (i32, i32) {
    %c0_i32 = arith.constant 0 : i32
    %c0_i32_0 = arith.constant 0 : i32
    %c0_i32_1 = arith.constant 0 : i32
    return %c0_i32, %c0_i32_0 : i32, i32
  }
  func.func @transform_6(%arg0: i32) -> (i32, i32) {
    %c0_i32 = arith.constant 0 : i32
    %c0_i32_0 = arith.constant 0 : i32
    return %arg0, %c0_i32 : i32, i32
  }
}

</mosaic_0001>

<bundles_post_ra>
// kernel: tile.13
= control target key start
LH: loop header
LB: loop body
LE: loop exit
PB: predicated region body
PF: predicated region fallthrough
CT: control target
= control target key end

     0   :  { %s22_s0 = inlined_call_operand.vmem [shape: f32[64], index: 0, kind: input, shape index: {}]   ;;  %s23_s1 = inlined_call_operand.vmem [shape: f32[4,64], index: 1, kind: output, shape index: {}]  }
   0x1   :  { %v4_v0 = vld [vmem:[%s22_s0] ss:$0 sm:$0xff] }
   0x2   :  { %5 = vst [vmem:[%s23_s1] sm:$0xf] %v4_v0 }

// kernel: tile.14
= control target key start
LH: loop header
LB: loop body
LE: loop exit
PB: predicated region body
PF: predicated region fallthrough
CT: control target
= control target key end

     0   :  { %s7_s8 = smov 3  ;;  %vm9_vm0 = vcmask 523264   ;;  %s34_s9 = smov 64   ;;  %vm16_vm1 = vcmask 1048064   ;;  %s54_s0 = inlined_call_operand.vmem [shape: f32[4,64], index: 0, kind: input, shape index: {}]   ;;  %s55_s1 = inlined_call_operand.vmem [shape: f32[1,256], index: 1, kind: output, shape index: {}]  }
   0x1   :  { %v5_v0 = vld [vmem:[%s54_s0] sm:$0xf]  ;;  %s12_s0 = smov 3 }
   0x2   :  { %6 = vst [vmem:[#allocation1] sm:$0xf] %v5_v0 }
   0x9   :  { %v13_v1 = vld [vmem:[#allocation1 + $0x1] ss:$2 sm:%s12_s0]   ;;  %v8_v2 = vld [vmem:[#allocation1] ss:$2 sm:%s7_s8]  }
   0xa   :  { %14 = vrot.lane.b32.xlu0 %v13_v1, %s34_s9  ;;  %10 = vst.msk [vmem:[#allocation0] ss:$8 sm:$0x3] %vm9_vm0, %v8_v2  }
  0x7c   :  { %v15_v3 = vpop.permute.xlu0 %14  }
  0x7d   :  { %17 = vst.msk [vmem:[#allocation0] ss:$8 sm:$0x3] %vm16_vm1, %v15_v3  }
  0x84   :  { %v22_v4 = vld [vmem:[#allocation0] sm:$0x1]  ;;  %v27_v5 = vld [vmem:[#allocation0 + $0x8] sm:$0x1] }
  0x85   :  { %25 = vst [vmem:[%s55_s1] sm:$0x1] %v22_v4  ;;  %32 = vst [vmem:[%s55_s1 + $0x1] sm:$0x1] %v27_v5 }

// kernel: tile.18
= control target key start
LH: loop header
LB: loop body
LE: loop exit
PB: predicated region body
PF: predicated region fallthrough
CT: control target
= control target key end

     0   :  { %s22_s0 = inlined_call_operand.vmem [shape: f32[32], index: 0, kind: input, shape index: {}]   ;;  %s23_s1 = inlined_call_operand.vmem [shape: f32[4,32], index: 1, kind: output, shape index: {}]  }
   0x1   :  { %v4_v0 = vld [vmem:[%s22_s0] ss:$0 sm:$0xff] }
   0x2   :  { %5 = vst [vmem:[%s23_s1] sm:$0xf] %v4_v0 }

// kernel: tile.19
= control target key start
LH: loop header
LB: loop body
LE: loop exit
PB: predicated region body
PF: predicated region fallthrough
CT: control target
= control target key end

     0   :  { %vm8_vm0 = vcmask 261120   ;;  %s40_s8 = smov 32   ;;  %s41_s9 = smov 64   ;;  %vm14_vm1 = vcmask 1048320   ;;  %vm20_vm2 = vcmask 785920   ;;  %vm26_vm3 = vcmask 523520   ;;  %s58_s0 = inlined_call_operand.vmem [shape: f32[4,32], index: 0, kind: input, shape index: {}]   ;;  %s59_s1 = inlined_call_operand.vmem [shape: f32[1,128], index: 1, kind: output, shape index: {}]  }
   0x1   :  { %v5_v0 = vld [vmem:[%s58_s0] sm:$0xf]  ;;  %s39_s0 = smov 96  }
   0x2   :  { %6 = vst [vmem:[#allocation1] sm:$0xf] %v5_v0 }
   0x9   :  { %v11_v1 = vld [vmem:[#allocation1 + $0x3] sm:$0x1]   ;;  %v23_v2 = vld [vmem:[#allocation1 + $0x1] sm:$0x1]   ;;  %v7_v3 = vld [vmem:[#allocation1] sm:$0x1]  }
   0xa   :  { %12 = vrot.lane.b32.xlu0 %v11_v1, %s39_s0  ;;  %24 = vrot.lane.b32.xlu1 %v23_v2, %s40_s8  ;;  %v17_v4 = vld [vmem:[#allocation1 + $0x2] sm:$0x1]   ;;  %9 = vst.msk [vmem:[#allocation0] sm:$0x1] %vm8_vm0, %v7_v3  }
   0xe   :  { %18 = vrot.lane.b32.xlu0 %v17_v4, %s41_s9 }
  0x7c   :  { %v13_v5 = vpop.permute.xlu0 %12   ;;  %v25_v6 = vpop.permute.xlu1 %24  }
  0x7d   :  { %15 = vst.msk [vmem:[#allocation0] sm:$0x1] %vm14_vm1, %v13_v5  }
  0x80   :  { %v19_v7 = vpop.permute.xlu0 %18  }
  0x81   :  { %21 = vst.msk [vmem:[#allocation0] sm:$0x1] %vm20_vm2, %v19_v7  }
  0x82   :  { %27 = vst.msk [vmem:[#allocation0] sm:$0x1] %vm26_vm3, %v25_v6  }
  0x89   :  { %v32_v8 = vld [vmem:[#allocation0] sm:$0x1] }
  0x8a   :  { %35 = vst [vmem:[%s59_s1] sm:$0x1] %v32_v8 }

// kernel: fully_connected_output.1
= control target key start
LH: loop header
LB: loop body
LE: loop exit
PB: predicated region body
PF: predicated region fallthrough
CT: control target
= control target key end

     0   :  { %v721_v1 = vmov 0.0   ;;  %vm722_vm0 = vmmov 0   ;;  %v723_v31 = vmov 0   ;;  %v227_v59 = vlaneseq  ;;  %s897_s0 = inlined_call_operand.vmem [shape: f32[4,128], index: 0, kind: input, shape index: {}]   ;;  %s898_s1 = inlined_call_operand.vmem [shape: bf16[128,128], index: 1, kind: input, shape index: {}]   ;;  %s899_s2 = inlined_call_operand.vmem [shape: bf16[128,256], index: 2, kind: input, shape index: {}]   ;;  %s900_s3 = inlined_call_operand.vmem [shape: f32[1,256], index: 3, kind: input, shape index: {}]   ;;  %s901_s4 = inlined_call_operand.vmem [shape: bf16[256,128], index: 4, kind: input, shape index: {}]   ;;  %s902_s5 = inlined_call_operand.vmem [shape: f32[1,128], index: 5, kind: input, shape index: {}]   ;;  %s903_s6 = inlined_call_operand.vmem [shape: f32[4,128], index: 6, kind: output, shape index: {}]  }
   0x1   :  { %v671_v0 = vld [vmem:[%s898_s1 + $0x38] sm:$0xff]   ;;  %628 = vmatprep.subr.bf16.mxu0 %v721_v1  ;;  %648 = vmatprep.subr.bf16.mxu1 %v721_v1  ;;  %v672_v2 = vld [vmem:[%s898_s1 + $0x30] sm:$0xff]   ;;  %v673_v3 = vld [vmem:[%s898_s1 + $0x28] sm:$0xff]  }
   0x2   :  { %629 = vmatpush3.bf16.msra.mxu0 %v671_v0  ;;  %644 = vmatprep.mubr.msk.bf16.mxu0 %vm722_vm0, %v721_v1  ;;  %v674_v4 = vld [vmem:[%s898_s1 + $0x20] sm:$0xff]   ;;  %v675_v5 = vld [vmem:[%s898_s1 + $0x18] sm:$0xff]   ;;  %v676_v6 = vld [vmem:[%s898_s1 + $0x10] sm:$0xff]   ;;  %v228_v60 = vshrl.u32 %v227_v59, 7 }
   0x3   :  { %630 = vmatprep.subr.bf16.mxu0 %v721_v1  ;;  %649 = vmatpush3.bf16.msra.mxu1 %v671_v0  ;;  %v677_v7 = vld [vmem:[%s898_s1 + $0x8] sm:$0xff]   ;;  %v678_v8 = vld [vmem:[%s898_s1] sm:$0xff]   ;;  %v679_v11 = vld [vmem:[%s899_s2 + $0x70] ss:$8 sps:$4 sm:$0xff]  }
   0x4   :  { %650 = vmatprep.subr.bf16.mxu1 %v721_v1  ;;  %664 = vmatprep.mubr.msk.bf16.mxu1 %vm722_vm0, %v721_v1  ;;  %v786_v9 = vld [vmem:[%s897_s0] sm:$0xff]  ;;  %v681_v12 = vld [vmem:[%s899_s2 + $0x74] ss:$8 sps:$4 sm:$0xff]   ;;  %v685_v16 = vld [vmem:[%s899_s2 + $0x50] ss:$8 sps:$4 sm:$0xff]   ;;  %v229_v61 = vsub.s32 0, %v228_v60 }
   0x5   :  { %v91_v10 = vpack.c.bf16 %v786_v9, %v786_v9  ;;  %v684_v13 = vld [vmem:[%s899_s2 + $0x64] ss:$8 sps:$4 sm:$0xff]   ;;  %v682_v14 = vld [vmem:[%s899_s2 + $0x60] ss:$8 sps:$4 sm:$0xff]   ;;  %v687_v15 = vld [vmem:[%s899_s2 + $0x54] ss:$8 sps:$4 sm:$0xff]  }
   0x6   :  { %631 = vmatpush3.bf16.msra.mxu0 %v672_v2  ;;  %v690_v24 = vld [vmem:[%s899_s2 + $0x44] ss:$8 sps:$4 sm:$0xff]   ;;  %v688_v25 = vld [vmem:[%s899_s2 + $0x40] ss:$8 sps:$4 sm:$0xff]   ;;  %v693_v26 = vld [vmem:[%s899_s2 + $0x34] ss:$8 sps:$4 sm:$0xff]  }
   0x7   :  { %632 = vmatprep.subr.bf16.mxu0 %v721_v1  ;;  %651 = vmatpush3.bf16.msra.mxu1 %v672_v2  ;;  %v691_v27 = vld [vmem:[%s899_s2 + $0x30] ss:$8 sps:$4 sm:$0xff]   ;;  %v694_v28 = vld [vmem:[%s899_s2 + $0x20] ss:$8 sps:$4 sm:$0xff]   ;;  %v696_v29 = vld [vmem:[%s899_s2 + $0x24] ss:$8 sps:$4 sm:$0xff]  }
   0x8   :  { %652 = vmatprep.subr.bf16.mxu1 %v721_v1  ;;  %v699_v30 = vld [vmem:[%s899_s2 + $0x14] ss:$8 sps:$4 sm:$0xff]   ;;  %v697_v32 = vld [vmem:[%s899_s2 + $0x10] ss:$8 sps:$4 sm:$0xff]   ;;  %v702_v33 = vld [vmem:[%s899_s2 + $0x4] ss:$8 sps:$4 sm:$0xff]  }
   0x9   :  { %v700_v34 = vld [vmem:[%s899_s2] ss:$8 sps:$4 sm:$0xff]   ;;  %v703_v35 = vld [vmem:[%s901_s4 + $0x78] sm:$0xff]   ;;  %v705_v37 = vld [vmem:[%s901_s4 + $0x70] sm:$0xff]   ;;  %v233_v63 = vsub.s32 1, %v228_v60 }
   0xa   :  { %633 = vmatpush3.bf16.msra.mxu0 %v673_v3  ;;  %v704_v36 = vld [vmem:[%s901_s4 + $0x38] sm:$0xff]   ;;  %v706_v38 = vld [vmem:[%s901_s4 + $0x30] sm:$0xff]   ;;  %v707_v39 = vld [vmem:[%s901_s4 + $0x68] sm:$0xff]  }
   0xb   :  { %634 = vmatprep.subr.bf16.mxu0 %v721_v1  ;;  %653 = vmatpush3.bf16.msra.mxu1 %v673_v3  ;;  %v708_v40 = vld [vmem:[%s901_s4 + $0x28] sm:$0xff]   ;;  %v709_v41 = vld [vmem:[%s901_s4 + $0x60] sm:$0xff]   ;;  %v711_v43 = vld [vmem:[%s901_s4 + $0x58] sm:$0xff]  }
   0xc   :  { %654 = vmatprep.subr.bf16.mxu1 %v721_v1  ;;  %v710_v42 = vld [vmem:[%s901_s4 + $0x20] sm:$0xff]   ;;  %v712_v44 = vld [vmem:[%s901_s4 + $0x18] sm:$0xff]   ;;  %v713_v45 = vld [vmem:[%s901_s4 + $0x50] sm:$0xff]  }
   0xd   :  { %v714_v46 = vld [vmem:[%s901_s4 + $0x10] sm:$0xff]   ;;  %v715_v55 = vld [vmem:[%s901_s4 + $0x48] sm:$0xff]   ;;  %v717_v57 = vld [vmem:[%s901_s4 + $0x40] sm:$0xff]  }
   0xe   :  { %635 = vmatpush3.bf16.msra.mxu0 %v674_v4  ;;  %v716_v56 = vld [vmem:[%s901_s4 + $0x8] sm:$0xff]   ;;  %v718_v58 = vld [vmem:[%s901_s4] sm:$0xff]  }
   0xf   :  { %636 = vmatprep.subr.bf16.mxu0 %v721_v1  ;;  %655 = vmatpush3.bf16.msra.mxu1 %v674_v4  ;;  %v56_v62 = vld [vmem:[%s900_s3] sm:$0x3] }
  0x10   :  { %656 = vmatprep.subr.bf16.mxu1 %v721_v1  ;;  %v230_v0 = vrot.slane %v56_v62, %v229_v61 }
  0x12   :  { %637 = vmatpush3.bf16.msra.mxu0 %v675_v5 }
  0x13   :  { %638 = vmatprep.subr.bf16.mxu0 %v721_v1  ;;  %657 = vmatpush3.bf16.msra.mxu1 %v675_v5 }
  0x14   :  { %658 = vmatprep.subr.bf16.mxu1 %v721_v1 }
  0x16   :  { %639 = vmatpush3.bf16.msra.mxu0 %v676_v6 }
  0x17   :  { %640 = vmatprep.subr.bf16.mxu0 %v721_v1  ;;  %659 = vmatpush3.bf16.msra.mxu1 %v676_v6 }
  0x18   :  { %660 = vmatprep.subr.bf16.mxu1 %v721_v1 }
  0x1a   :  { %641 = vmatpush3.bf16.msra.mxu0 %v677_v7 }
  0x1b   :  { %642 = vmatprep.subr.bf16.mxu0 %v721_v1  ;;  %661 = vmatpush3.bf16.msra.mxu1 %v677_v7 }
  0x1c   :  { %662 = vmatprep.subr.bf16.mxu1 %v721_v1  ;;  %v234_v1 = vrot.slane %v56_v62, %v233_v63 }
  0x1e   :  { %643 = vmatpush3.bf16.msra.mxu0 %v678_v8 }
  0x1f   :  { %663 = vmatpush3.bf16.msra.mxu1 %v678_v8  ;;  %317 = vmatprep.subr.bf16.mxu0 %v681_v12 }
  0x20   :  { %606 = vmatprep.subr.bf16.mxu1 %v703_v35 }
  0x21   :  { %645 = vmatmul.mubr.bf16.vlgmr.msra.gmra.mxu0 %v91_v10 }
  0x22   :  { %318 = vmatpush1.bf16.msra.mxu0 %v679_v11  ;;  %349 = vmatprep.mubr.bf16.mxu0 %v723_v31 }
  0x23   :  { %319 = vmatprep.subr.bf16.mxu0 %v684_v13 }
  0x26   :  { %320 = vmatpush1.bf16.msra.mxu0 %v682_v14  ;;  %v571_v14 = vld [vmem:[%s902_s5] ss:$0 sm:$0xff] }
  0x27   :  { %321 = vmatprep.subr.bf16.mxu0 %v687_v15 }
  0x2a   :  { %322 = vmatpush1.bf16.msra.mxu0 %v685_v16 }
  0x2b   :  { %323 = vmatprep.subr.bf16.mxu0 %v690_v24 }
  0x2e   :  { %324 = vmatpush1.bf16.msra.mxu0 %v688_v25 }
  0x2f   :  { %325 = vmatprep.subr.bf16.mxu0 %v693_v26 }
  0x32   :  { %326 = vmatpush1.bf16.msra.mxu0 %v691_v27 }
  0x33   :  { %327 = vmatprep.subr.bf16.mxu0 %v696_v29 }
  0x36   :  { %328 = vmatpush1.bf16.msra.mxu0 %v694_v28 }
  0x37   :  { %329 = vmatprep.subr.bf16.mxu0 %v699_v30 }
  0x3a   :  { %330 = vmatpush1.bf16.msra.mxu0 %v697_v32 }
  0x3b   :  { %331 = vmatprep.subr.bf16.mxu0 %v702_v33 }
  0x3e   :  { %332 = vmatpush1.bf16.msra.mxu0 %v700_v34 }
  0xe1   :  { %v174_v17 = vpop.f32.mrf.mxu0 }
  0xe2   :  { %v180_v18 = vsub.f32 %v786_v9, %v174_v17 }
  0xe3   :  { %v646_v19 = vpop.f32.mrf.mxu0 }
  0xe4   :  { %v181_v20 = vmul.f32 %v180_v18, %v180_v18 }
  0xe5   :  { %v177_v21 = vpop.f32.mrf.mxu0 }
  0xe6   :  { %v182_v22 = vpack.c.bf16 %v181_v20, %v181_v20 }
  0xe7   :  { %v647_v23 = vpop.f32.mrf.mxu0 }
  0xe8   :  { %665 = vmatmul.mubr.bf16.vlgmr.msra.gmra.mxu1 %v182_v22 }
  0xe9   :  { %607 = vmatpush3.bf16.msra.mxu1 %v704_v36 }
  0xea   :  { %608 = vmatprep.subr.bf16.mxu1 %v705_v37 }
  0xed   :  { %609 = vmatpush3.bf16.msra.mxu1 %v706_v38 }
  0xee   :  { %610 = vmatprep.subr.bf16.mxu1 %v707_v39 }
  0xf1   :  { %611 = vmatpush3.bf16.msra.mxu1 %v708_v40 }
  0xf2   :  { %612 = vmatprep.subr.bf16.mxu1 %v709_v41 }
  0xf5   :  { %613 = vmatpush3.bf16.msra.mxu1 %v710_v42 }
  0xf6   :  { %614 = vmatprep.subr.bf16.mxu1 %v711_v43 }
  0xf9   :  { %615 = vmatpush3.bf16.msra.mxu1 %v712_v44 }
  0xfa   :  { %616 = vmatprep.subr.bf16.mxu1 %v713_v45 }
  0xfd   :  { %617 = vmatpush3.bf16.msra.mxu1 %v714_v46 }
  0xfe   :  { %618 = vmatprep.subr.bf16.mxu1 %v715_v55 }
 0x101   :  { %619 = vmatpush3.bf16.msra.mxu1 %v716_v56 }
 0x102   :  { %620 = vmatprep.subr.bf16.mxu1 %v717_v57 }
 0x105   :  { %621 = vmatpush3.bf16.msra.mxu1 %v718_v58 }
 0x1a8   :  { %v217_v47 = vpop.f32.mrf.mxu1 }
 0x1a9   :  { %v218_v48 = vadd.f32 1e-05, %v217_v47 }
 0x1aa   :  { %v666_v49 = vpop.f32.mrf.mxu1 }
 0x1ab   :  { %719 = vrsqrt.f32 %v218_v48 }
 0x1ac   :  { %v220_v50 = vpop.f32.mrf.mxu1 }
 0x1ae   :  { %v667_v51 = vpop.f32.mrf.mxu1 }
 0x1b8   :  { %v720_v52 = vpop.eup %719 }
 0x1b9   :  { %v224_v53 = vmul.f32 %v720_v52, %v180_v18 }
 0x1bb   :  { %v225_v54 = vpack.c.bf16 %v224_v53, %v224_v53 }
 0x1bd   :  { %350 = vmatmul.mubr.bf16.vlgmr.msra.gmra.mxu0 %v225_v54 }
 0x27d   :  { %v351_v2 = vpop.f32.mrf.mxu0 }
 0x27e   :  { %v352_v3 = vadd.f32 %v351_v2, %v230_v0 }
 0x27f   :  { %v353_v4 = vpop.f32.mrf.mxu0 }
 0x280   :  { %v354_v5 = vadd.f32 %v353_v4, %v234_v1  ;;  %v358_v6 = vmax.f32 %v352_v3, 0.0 }
 0x281   :  { %v355_v7 = vpop.f32.mrf.mxu0 }
 0x282   :  { %v359_v8 = vmax.f32 %v354_v5, 0.0  ;;  %v360_v12 = vpack.c.bf16 %v358_v6, %v358_v6 }
 0x283   :  { %v356_v10 = vpop.f32.mrf.mxu0 }
 0x284   :  { %v361_v11 = vpack.c.bf16 %v359_v8, %v359_v8 }
 0x286   :  { %496 = vmatprep.mubr.bf16.mxu1 %v361_v11 }
 0x287   :  { %497 = vmatmul.mubr.bf16.vlgmr.msra.gmra.mxu1 %v360_v12 }
 0x347   :  { %v622_v13 = vpop.f32.mrf.mxu1 }
 0x349   :  { %v623_v15 = vpop.f32.mrf.mxu1 }
 0x34a   :  { %v624_v16 = vadd.f32 %v623_v15, %v622_v13 }
 0x34b   :  { %v625_v17 = vpop.f32.mrf.mxu1 }
 0x34c   :  { %v499_v18 = vadd.f32 %v624_v16, %v571_v14 }
 0x34d   :  { %v626_v19 = vpop.f32.mrf.mxu1 }
 0x34e   :  { %v504_v20 = vadd.f32 %v499_v18, %v786_v9 }
 0x350   :  { %505 = vst [vmem:[#allocation2] sm:$0xff] %v504_v20 }
 0x357   :  { %v524_v21 = vld [vmem:[#allocation2] sm:$0xf] }
 0x358   :  { %525 = vst [vmem:[%s903_s6] sm:$0xf] %v524_v21 }

</bundles_post_ra>
